<compile_context>
chip_gen: v5e
topology: v5e:2x2
jax: 0.10.0
libtpu: 0.0.40
codegen_flags: <defaults>
</compile_context>

<pallas_src>
import functools

import jax
import jax.numpy as jnp
from jax import lax
from jax.experimental import pallas as pl
from jax.experimental.pallas import tpu as pltpu

LANES = 128
ACC_ROWS = 64                        # fixed accumulator height: 8 f32 vregs = 32 KiB
VMEM_BUDGET = 24 * 1024 * 1024       # target resident bytes (pipelined buffers + temps)
VMEM_LIMIT = 32 * 1024 * 1024        # scoped VMEM limit (<= physical on v5e/v6e/v7x)


def _pick_row_tile(itemsize: int) -> int:
    """Largest row tile whose pipelined buffers + worst-case f32 temporaries fit VMEM_BUDGET.

    Per 128-lane row: 2 inputs x 2 pipeline buffers in the input dtype, plus ~6
    f32-sized temporaries (casts, diff, |.|/sq, iota, select on the masked edge tile).
    """
    per_row_bytes = (2 * 2 * itemsize + 6 * 4) * LANES
    rows = VMEM_BUDGET // per_row_bytes
    return max(ACC_ROWS, (rows // ACC_ROWS) * ACC_ROWS)


def _recon_loss_kernel(a_ref, b_ref, o_ref, acc_ref, *,
                       rows_total, row_tile, loss_type, needs_mask, single_block):
    """Reduce sum(|a-b|) or sum((a-b)^2) over (row_tile, 128) tiles into (1, 128) lane partials."""
    d = a_ref[...].astype(jnp.float32) - b_ref[...].astype(jnp.float32)
    v = d * d if loss_type == "l2" else jnp.abs(d)

    if single_block:
        # Whole slab is one full-extent block: no carry, no masking needed.
        o_ref[...] = jnp.sum(v, axis=0, keepdims=True)
        return

    t = pl.program_id(0)
    nt = pl.num_programs(0)

    @pl.when(t == 0)
    def _():
        acc_ref[...] = jnp.zeros_like(acc_ref)

    def fold(x):
        # Vreg-wise fold into the fixed (ACC_ROWS, 128) accumulator: pure VPU adds,
        # no cross-sublane traffic until the final step.
        return x.reshape(-1, ACC_ROWS, LANES).sum(axis=0)

    if needs_mask:
        # Only the last tile can be partial; interior tiles skip the mask entirely.
        @pl.when(t == nt - 1)
        def _():
            row_ids = t * row_tile + lax.broadcasted_iota(jnp.int32, (row_tile, LANES), 0)
            acc_ref[...] += fold(jnp.where(row_ids < rows_total, v, 0.0))

        @pl.when(t < nt - 1)
        def _():
            acc_ref[...] += fold(v)
    else:
        acc_ref[...] += fold(v)

    @pl.when(t == nt - 1)
    def _():
        # Single deferred cross-sublane (XLU) reduction -> (1, 128) lane partials.
        o_ref[...] = jnp.sum(acc_ref[...], axis=0, keepdims=True)


def reconstruction_loss(sr: jax.Array, hr: jax.Array, loss_type: str = "l1") -> jax.Array:
    """Equivalent of ReconstructionLoss.forward: L1Loss / MSELoss (mean reduction)."""
    if loss_type not in ("l1", "l2"):
        raise SystemExit("Error: no such type of ReconstructionLoss!")
    assert sr.shape == hr.shape
    n_valid = sr.size
    if n_valid == 0:
        return jnp.float32(jnp.nan)  # mean over an empty tensor (PyTorch parity)

    a = sr.reshape(-1)
    b = hr.reshape(-1)

    # Non-multiple-of-128 tail (< 128 elements): reduce it in plain JAX so the kernel
    # path never pads or rewrites the whole array.
    rem = n_valid % LANES
    main = n_valid - rem
    if rem:
        dt = a[main:].astype(jnp.float32) - b[main:].astype(jnp.float32)
        tail_sum = jnp.sum(dt * dt) if loss_type == "l2" else jnp.sum(jnp.abs(dt))
        a = a[:main]
        b = b[:main]
    else:
        tail_sum = jnp.float32(0.0)

    if main == 0:
        return tail_sum / jnp.float32(n_valid)

    rows = main // LANES
    a2 = a.reshape(rows, LANES)
    b2 = b.reshape(rows, LANES)

    itemsize = jnp.dtype(sr.dtype).itemsize
    budget_rows = _pick_row_tile(itemsize)

    single_block = rows <= budget_rows
    if single_block:
        row_tile = rows          # full-extent block: always legal, no mask needed
        num_tiles = 1
        needs_mask = False
    else:
        row_tile = budget_rows   # multiple of ACC_ROWS (and of 8/16/32 sublane packing)
        num_tiles = pl.cdiv(rows, row_tile)
        needs_mask = (rows % row_tile) != 0

    kernel = functools.partial(
        _recon_loss_kernel,
        rows_total=rows,
        row_tile=row_tile,
        loss_type=loss_type,
        needs_mask=needs_mask,
        single_block=single_block,
    )

    lane_partials = pl.pallas_call(
        kernel,
        out_shape=jax.ShapeDtypeStruct((1, LANES), jnp.float32),
        grid_spec=pltpu.PrefetchScalarGridSpec(
            num_scalar_prefetch=0,
            grid=(num_tiles,),
            in_specs=[
                pl.BlockSpec((row_tile, LANES), lambda t: (t, 0)),
                pl.BlockSpec((row_tile, LANES), lambda t: (t, 0)),
            ],
            out_specs=pl.BlockSpec((1, LANES), lambda t: (0, 0)),
            scratch_shapes=[pltpu.VMEM((ACC_ROWS, LANES), jnp.float32)],
        ),
        compiler_params=pltpu.CompilerParams(
            dimension_semantics=("arbitrary",),   # output block carried across the axis
            vmem_limit_bytes=VMEM_LIMIT,
        ),
    )(a2, b2)

    return (jnp.sum(lane_partials) + tail_sum) / jnp.float32(n_valid)


def _ref_loss(sr, hr, loss_type):
    d = sr.astype(jnp.float32) - hr.astype(jnp.float32)
    return jnp.mean(d * d) if loss_type == "l2" else jnp.mean(jnp.abs(d))


if __name__ == "__main__":
    key = jax.random.PRNGKey(0)
    k1, k2 = jax.random.split(key)

    # Primary shapes consistent with the module: sr / hr image batches (N, C, H, W).
    shape = (2, 4, 16, 16)
    sr = jax.random.normal(k1, shape, dtype=jnp.float32)
    hr = jax.random.normal(k2, shape, dtype=jnp.float32)

    loss_l1 = reconstruction_loss(sr, hr, loss_type="l1")   # module default type='l1'
    loss_l2 = reconstruction_loss(sr, hr, loss_type="l2")
    jax.block_until_ready((loss_l1, loss_l2))

    assert jnp.allclose(loss_l1, _ref_loss(sr, hr, "l1"), rtol=1e-5, atol=1e-6)
    assert jnp.allclose(loss_l2, _ref_loss(sr, hr, "l2"), rtol=1e-5, atol=1e-6)

    # Also exercise the non-multiple-of-128 tail path with a small ragged shape.
    shape_r = (3, 3, 7, 5)   # 315 elements
    sr_r = jax.random.normal(k1, shape_r, dtype=jnp.float32)
    hr_r = jax.random.normal(k2, shape_r, dtype=jnp.float32)
    loss_r = reconstruction_loss(sr_r, hr_r, loss_type="l1")
    jax.block_until_ready(loss_r)
    assert jnp.allclose(loss_r, _ref_loss(sr_r, hr_r, "l1"), rtol=1e-5, atol=1e-6)

    print("KERNEL_OK")
</pallas_src>

<mosaic_0001>
module attributes {stable_mosaic.version = 11 : i64} {
  func.func @_recon_loss_kernel(%arg0: i32, %arg1: memref<16x128xf32, #tpu.memory_space<vmem>>, %arg2: memref<16x128xf32, #tpu.memory_space<vmem>>, %arg3: memref<1x128xf32, #tpu.memory_space<vmem>>, %arg4: memref<64x128xf32, #tpu.memory_space<vmem>>) attributes {dimension_semantics = [#tpu.dimension_semantics<arbitrary>], iteration_bounds = array<i64: 1>, scalar_prefetch = 0 : i64, scratch_operands = 1 : i64, tpu.core_type = #tpu.core_type<tc>, window_params = [{transform_indices = @transform_0, window_bounds = array<i64: 16, 128>}, {transform_indices = @transform_1, window_bounds = array<i64: 16, 128>}, {pipeline_mode = #tpu.pipeline_mode<synchronous>, transform_indices = @transform_2, window_bounds = array<i64: 1, 128>}]} {
    %c0 = arith.constant 0 : index
    %c0_0 = arith.constant 0 : index
    %0 = vector.load %arg1[%c0, %c0_0] : memref<16x128xf32, #tpu.memory_space<vmem>>, vector<16x128xf32>
    %c0_1 = arith.constant 0 : index
    %c0_2 = arith.constant 0 : index
    %1 = vector.load %arg2[%c0_1, %c0_2] : memref<16x128xf32, #tpu.memory_space<vmem>>, vector<16x128xf32>
    %2 = arith.subf %0, %1 : vector<16x128xf32>
    %3 = math.absf %2 : vector<16x128xf32>
    %cst = arith.constant dense<0.000000e+00> : vector<128xf32>
    %4 = vector.multi_reduction <add>, %3, %cst [0] : vector<16x128xf32> to vector<128xf32>
    %5 = vector.shape_cast %4 : vector<128xf32> to vector<1x128xf32>
    %c0_3 = arith.constant 0 : index
    %c0_4 = arith.constant 0 : index
    %6 = vector.load %arg3[%c0_3, %c0_4] : memref<1x128xf32, #tpu.memory_space<vmem>>, vector<1x128xf32>
    tpu.vector_store %arg3[%c0_3, %c0_4], %5 {strides = array<i32>} : memref<1x128xf32, #tpu.memory_space<vmem>>, vector<1x128xf32>,
    return
  }
  func.func @transform_0(%arg0: i32) -> (i32, i32) {
    %c0_i32 = arith.constant 0 : i32
    %c0_i32_0 = arith.constant 0 : i32
    return %arg0, %c0_i32 : i32, i32
  }
  func.func @transform_1(%arg0: i32) -> (i32, i32) {
    %c0_i32 = arith.constant 0 : i32
    %c0_i32_0 = arith.constant 0 : i32
    return %arg0, %c0_i32 : i32, i32
  }
  func.func @transform_2(%arg0: i32) -> (i32, i32) {
    %c0_i32 = arith.constant 0 : i32
    %c0_i32_0 = arith.constant 0 : i32
    %c0_i32_1 = arith.constant 0 : i32
    return %c0_i32, %c0_i32_0 : i32, i32
  }
}

</mosaic_0001>

<bundles_post_ra>
// kernel: tpu_custom_call.1
= control target key start
LH: loop header
LB: loop body
LE: loop exit
PB: predicated region body
PF: predicated region fallthrough
CT: control target
= control target key end

     0   :  { %7 = vsyncpa [#allocation4], 0  ;;  %s190_s0 = inlined_call_operand.hbm [shape: f32[16,128], index: 0, kind: input, shape index: {}]   ;;  %s191_s1 = inlined_call_operand.hbm [shape: f32[16,128], index: 1, kind: input, shape index: {}]   ;;  %s192_s2 = inlined_call_operand.hbm [shape: f32[1,128], index: 2, kind: output, shape index: {}]  }
   0x1   :  { %8 = vsyncpa [#allocation7], 0 }
   0x2   :  { %9 = vsyncpa [#allocation5], 0  ;;  %s14_s11 = sshll.u32 %s190_s0, 4  ;;  %s161_s12 = smov [#allocation3]   ;;  %s15_s11 = int_to_ptr.hbm [resolvable:$true] %s14_s11 }
   0x3   :  { %s16_s13 = sshll.u32 %s161_s12, 4  ;;  %s27_s16 = sshll.u32 %s191_s1, 4  ;;  %s17_s13 = int_to_ptr.vmem [resolvable:$true] %s16_s13  ;;  %s28_s16 = int_to_ptr.hbm [resolvable:$true] %s27_s16 }
   0x4   :  { %s162_s17 = smov 128   ;;  %s163_s18 = smov 8  }
   0x5   :  { %22 = dma.hbm_to_vmem [thread:$0]  %s15_s11, 256, %s17_s13, [#allocation4], %s162_s17, %s162_s17, %s163_s18  }
   0x6   :  { %s164_s19 = smov [#allocation6]  }
   0x7   :  { %s29_s20 = sshll.u32 %s164_s19, 4  ;;  %s30_s20 = int_to_ptr.vmem [resolvable:$true] %s29_s20 }
   0x8   :  { %35 = dma.hbm_to_vmem [thread:$0]  %s28_s16, 256, %s30_s20, [#allocation7], %s162_s17, %s162_s17, %s163_s18  }
   0x9   :  { %155 = dma.done.wait [#allocation4], 256  }
   0xa   :  { %156 = vsyncadd [#allocation4], 4294967040 }
   0xb   :  { %157 = dma.done.wait [#allocation7], 256  }
   0xc   :  { %158 = vsyncadd [#allocation7], 4294967040  ;;  %v44_v0 = vld [vmem:[#allocation3] sm:$0xff]  ;;  %v45_v1 = vld [vmem:[#allocation3 + $0x8] sm:$0xff]  ;;  %s165_s0 = smov [#allocation8]   ;;  %s67_s23 = sshll.u32 %s192_s2, 4  ;;  %s68_s23 = int_to_ptr.hbm [resolvable:$true] %s67_s23 }
   0xd   :  { %v46_v2 = vld [vmem:[#allocation6] sm:$0xff]  ;;  %v47_v3 = vld [vmem:[#allocation6 + $0x8] sm:$0xff]  ;;  %s65_s1 = sshll.u32 %s165_s0, 4  ;;  %s66_s1 = int_to_ptr.vmem [resolvable:$true] %s65_s1 }
   0xe   :  { %v48_v4 = vsub.f32 %v44_v0, %v46_v2  ;;  %v49_v5 = vsub.f32 %v45_v1, %v47_v3 }
  0x10   :  { %v50_v6 = vand.u32 2147483647, %v48_v4  ;;  %v51_v7 = vand.u32 2147483647, %v49_v5 }
  0x12   :  { %v52_v8 = vadd.f32 %v51_v7, %v50_v6 }
  0x14   :  { %v53_v9 = vrot.slane %v52_v8, 4 }
  0x16   :  { %v54_v10 = vadd.f32 %v53_v9, %v52_v8 }
  0x18   :  { %v55_v11 = vrot.slane %v54_v10, 2 }
  0x1a   :  { %v56_v12 = vadd.f32 %v55_v11, %v54_v10 }
  0x1c   :  { %v57_v13 = vrot.slane %v56_v12, 1 }
  0x1e   :  { %v58_v14 = vadd.f32 %v57_v13, %v56_v12 }
  0x20   :  { %59 = vst [vmem:[#allocation8] sm:$0x1] %v58_v14 }
  0x21   :  { %70 = dma.vmem_to_hbm [thread:$0]  %s66_s1, 16, %s68_s23, [#allocation5]  }
  0x22   :  { %159 = dma.done.wait [#allocation5], 16  }
  0x23   :  { %160 = vsyncadd [#allocation5], 4294967280 }
  0x24   :  { %75 = vsyncpa [#allocation4], 1 }
  0x25   :  { %76 = vsyncpa [#allocation7], 1 }
  0x26   :  { %77 = vsyncpa [#allocation5], 1 }

</bundles_post_ra>
